<compile_context>
chip_gen: v7x
topology: tpu7x:2x2x1
jax: 0.10.0
libtpu: 0.0.40
codegen_flags: <defaults>
</compile_context>

<pallas_src>
import functools
import math

import jax
import jax.numpy as jnp
import numpy as np
from jax.experimental import pallas as pl
from jax.experimental.pallas import tpu as pltpu


def _pick_k_block(l_k, target=512, align=32):
    """Key-axis tile: largest divisor of l_k <= target that is a multiple of
    `align` (covers int8/bf16/f32 sublane tiling); falls back to untiled."""
    if l_k <= target:
        return l_k
    for d in range(target, 0, -1):
        if l_k % d == 0 and d % align == 0:
            return d
    return l_k


def _vmem_limit_bytes():
    """Best-effort scoped-VMEM budget (about half of physical); None -> default."""
    try:
        cap = int(pltpu.get_tpu_info().vmem_capacity_bytes)
        return max(32 * 1024 * 1024, min(cap // 2, 96 * 1024 * 1024))
    except Exception:
        return None


def _sample_score_kernel(ct_ref, q_ref, k_ref, m_ref, max_ref, sum_ref, *, inv_lk):
    """Accumulate, across key tiles, the sampled-key sparsity metric
    M[q] = max over sampled keys of S[q,k] - (1/L_K) * sum over sampled keys of S[q,k]
    using ct[k,q] = number of times key k was sampled for query q (int8)."""
    f32 = jnp.float32
    kt = pl.program_id(1)
    n_k = pl.num_programs(1)

    @pl.when(kt == 0)
    def _():
        max_ref[...] = jnp.full_like(max_ref, -jnp.inf)
        sum_ref[...] = jnp.zeros_like(sum_ref)

    ct = ct_ref[...].astype(f32)                                     # (blk_k, L_Q)
    # S^T[k, q] = K[k] . Q[q]   (bf16 MXU inputs, f32 accumulation)
    st = jax.lax.dot_general(k_ref[0], q_ref[0], (((1,), (1,)), ((), ())),
                             preferred_element_type=f32)             # (blk_k, L_Q)
    sum_ref[...] += jnp.sum(ct * st, axis=0, keepdims=True)          # duplicates weighted
    tile_max = jnp.max(jnp.where(ct > 0.0, st, -jnp.inf), axis=0, keepdims=True)
    max_ref[...] = jnp.maximum(max_ref[...], tile_max)

    @pl.when(kt == n_k - 1)
    def _():
        m_ref[0] = max_ref[...] - sum_ref[...] * inv_lk              # lane-dense row


def _top_attn_kernel(idx_sm_ref, qtop_ref, k_ref, v_ref, idxc_ref, o_ref,
                     m_ref, l_ref, acc_ref, carry_ref, *, mask_flag, inv_lv):
    """Online-softmax attention of the u pre-gathered (and pre-scaled) query rows
    over key/value tiles, plus in-kernel initial context (cumsum(V) or mean(V)),
    with the u attended rows scattered in f32 at the last key tile."""
    f32 = jnp.float32
    bf16 = jnp.bfloat16
    i = pl.program_id(0)
    kt = pl.program_id(1)
    n_k = pl.num_programs(1)
    _, l_q, d = o_ref.shape
    u = qtop_ref.shape[1]
    blk_k = k_ref.shape[1]

    @pl.when(kt == 0)
    def _():
        m_ref[...] = jnp.full_like(m_ref, -jnp.inf)
        l_ref[...] = jnp.zeros_like(l_ref)
        acc_ref[...] = jnp.zeros_like(acc_ref)
        carry_ref[...] = jnp.zeros_like(carry_ref)

    q_b = qtop_ref[0]                        # (u, D)     bf16, scale already folded in
    k_b = k_ref[0]                           # (blk_k, D) bf16
    v_f = v_ref[0]                           # (blk_k, D) f32
    v_b = v_f.astype(bf16)

    # ---- online softmax over this key tile ----
    s = jax.lax.dot_general(q_b, k_b, (((1,), (1,)), ((), ())),
                            preferred_element_type=f32)              # (u, blk_k)
    if mask_flag:
        key_pos = kt * blk_k + jax.lax.broadcasted_iota(jnp.int32, (u, blk_k), 1)
        s = jnp.where(key_pos > idxc_ref[0], -jnp.inf, s)            # causal ProbMask

    m_prev = m_ref[...]                                              # (u, 1)
    m_new = jnp.maximum(m_prev, jnp.max(s, axis=-1, keepdims=True))
    alpha = jnp.exp(m_prev - m_new)
    p = jnp.exp(s - m_new)
    l_ref[...] = alpha * l_ref[...] + jnp.sum(p, axis=-1, keepdims=True)
    acc_ref[...] = alpha * acc_ref[...] + jax.lax.dot_general(
        p.astype(bf16), v_b, (((1,), (0,)), ((), ())), preferred_element_type=f32)
    m_ref[...] = m_new

    # ---- initial context ----
    if mask_flag:
        # cumsum(V) rows for this tile's query range: tril-ones MXU matmul on a
        # hi/lo bf16 split of the f32 V tile (error ~2^-17 rel vs exact f32).
        r_io = jax.lax.broadcasted_iota(jnp.int32, (blk_k, blk_k), 0)
        c_io = jax.lax.broadcasted_iota(jnp.int32, (blk_k, blk_k), 1)
        tril = (c_io <= r_io).astype(bf16)
        v_hi = v_f.astype(bf16)
        v_lo = (v_f - v_hi.astype(f32)).astype(bf16)
        csum = (jax.lax.dot_general(tril, v_hi, (((1,), (0,)), ((), ())),
                                    preferred_element_type=f32)
                + jax.lax.dot_general(tril, v_lo, (((1,), (0,)), ((), ())),
                                      preferred_element_type=f32))   # (blk_k, D)
        start = pl.multiple_of(kt * blk_k, blk_k)
        o_ref[0, pl.ds(start, blk_k), :] = carry_ref[...] + csum
        carry_ref[...] += jnp.sum(v_f, axis=0, keepdims=True)        # prefix carry
    else:
        carry_ref[...] += jnp.sum(v_f, axis=0, keepdims=True)        # running V sum

    # ---- finalize: mean-context base (non-masked) + exact f32 scatter of u rows ----
    @pl.when(kt == n_k - 1)
    def _():
        if not mask_flag:
            o_ref[0] = jnp.broadcast_to(carry_ref[...] * inv_lv, (l_q, d))
        out = acc_ref[...] * pl.reciprocal(l_ref[...], approx=True)  # (u, D) f32
        for j in range(u):                    # u = factor * ceil(ln L_Q): small
            row = idx_sm_ref[i, j]
            o_ref[0, pl.ds(row, 1), :] = out[j:j + 1, :]


def prob_attention(queries, keys, values, attn_mask=None, *, factor=5, scale=None,
                   mask_flag=True, index_sample=None, rng_key=None, return_aux=False):
    """Equivalent of ProbAttention.forward (output_attention=False).
    queries/keys/values: (B, L, H, D).  attn_mask is ignored (the torch path
    recomputes the ProbMask internally).  nn.Dropout is declared in the torch
    module but never applied in forward()."""
    B, L_Q, H, D = queries.shape
    _, L_K, _, _ = keys.shape

    U_part = min(factor * int(np.ceil(np.log(L_K))), L_K)
    u = min(factor * int(np.ceil(np.log(L_Q))), L_Q)

    if index_sample is None:
        if rng_key is None:
            rng_key = jax.random.PRNGKey(0)
        index_sample = jax.random.randint(rng_key, (L_Q, U_part), 0, L_K, jnp.int32)
    index_sample = index_sample.astype(jnp.int32)

    if mask_flag:
        assert L_Q == L_K, "mask_flag=True requires L_Q == L_K (== L_V)"

    BH = B * H
    blk_k = _pick_k_block(L_K)
    n_k = L_K // blk_k
    vmem_limit = _vmem_limit_bytes()

    # (B,L,H,D) -> flattened (BH,L,D); bf16 MXU operands, V kept f32 for the
    # in-kernel cumsum / mean of the initial context.
    Qf = jnp.transpose(queries, (0, 2, 1, 3)).reshape(BH, L_Q, D).astype(jnp.float32)
    Kf = jnp.transpose(keys, (0, 2, 1, 3)).reshape(BH, L_K, D).astype(jnp.float32)
    Vf = jnp.transpose(values, (0, 2, 1, 3)).reshape(BH, L_K, D).astype(jnp.float32)
    Qb, Kb = Qf.astype(jnp.bfloat16), Kf.astype(jnp.bfloat16)

    # Sample-count matrix CT[k, q] = #{s : idx[q, s] == k}, built with a
    # scatter-add (no (L_Q, U_part, L_K) temp) and stored narrow.
    counts = jnp.zeros((L_Q, L_K), jnp.int32).at[
        jnp.arange(L_Q)[:, None], index_sample].add(1)
    ct_dtype = jnp.int8 if U_part <= 127 else jnp.int32
    CT = counts.T.astype(ct_dtype)                                   # (L_K, L_Q)

    # --- kernel 1: sparsity measurement over sampled keys (L_K tiled) ---
    M_flat = pl.pallas_call(
        functools.partial(_sample_score_kernel, inv_lk=1.0 / L_K),
        out_shape=jax.ShapeDtypeStruct((BH, 1, L_Q), jnp.float32),
        grid=(BH, n_k),
        in_specs=[
            pl.BlockSpec((blk_k, L_Q), lambda i, k: (k, 0)),          # counts (shared)
            pl.BlockSpec((1, L_Q, D), lambda i, k: (i, 0, 0)),        # Q (bf16)
            pl.BlockSpec((1, blk_k, D), lambda i, k: (i, k, 0)),      # K tile (bf16)
        ],
        out_specs=pl.BlockSpec((1, 1, L_Q), lambda i, k: (i, 0, 0)),
        scratch_shapes=[pltpu.VMEM((1, L_Q), jnp.float32),            # running max
                        pltpu.VMEM((1, L_Q), jnp.float32)],           # running sum
        compiler_params=pltpu.CompilerParams(
            dimension_semantics=("parallel", "arbitrary"),
            vmem_limit_bytes=vmem_limit),
    )(CT, Qb, Kb)
    M = M_flat.reshape(B, H, L_Q)

    # --- top-u query selection + gather (glue) ---
    _, M_top = jax.lax.top_k(M, u)                                    # (B,H,u) int32
    idx_flat = M_top.reshape(BH, u).astype(jnp.int32)                 # SMEM scalars
    idx_col = idx_flat.reshape(BH, u, 1)                              # VMEM (mask)

    scale_val = float(scale) if scale is not None else 1.0 / math.sqrt(D)
    q_top = jnp.take_along_axis(Qf, idx_flat[:, :, None], axis=1)     # (BH, u, D) f32
    q_top_b = (q_top * scale_val).astype(jnp.bfloat16)                # scale folded in

    # --- kernel 2: online-softmax top-u attention + in-kernel initial context ---
    kernel2 = functools.partial(_top_attn_kernel, mask_flag=mask_flag,
                                inv_lv=1.0 / L_K)
    context = pl.pallas_call(
        kernel2,
        out_shape=jax.ShapeDtypeStruct((BH, L_Q, D), jnp.float32),
        grid_spec=pltpu.PrefetchScalarGridSpec(
            num_scalar_prefetch=1,                                    # idx_flat -> SMEM
            grid=(BH, n_k),
            in_specs=[
                pl.BlockSpec((1, u, D), lambda i, k, idx: (i, 0, 0)),     # Q_top (bf16)
                pl.BlockSpec((1, blk_k, D), lambda i, k, idx: (i, k, 0)), # K tile (bf16)
                pl.BlockSpec((1, blk_k, D), lambda i, k, idx: (i, k, 0)), # V tile (f32)
                pl.BlockSpec((1, u, 1), lambda i, k, idx: (i, 0, 0)),     # idx (column)
            ],
            out_specs=pl.BlockSpec((1, L_Q, D), lambda i, k, idx: (i, 0, 0)),
            scratch_shapes=[pltpu.VMEM((u, 1), jnp.float32),          # running max
                            pltpu.VMEM((u, 1), jnp.float32),          # running denom
                            pltpu.VMEM((u, D), jnp.float32),          # unnormalized acc
                            pltpu.VMEM((1, D), jnp.float32)]),        # cumsum carry / V sum
        compiler_params=pltpu.CompilerParams(
            dimension_semantics=("parallel", "arbitrary"),
            vmem_limit_bytes=vmem_limit),
    )(idx_flat, q_top_b, Kb, Vf, idx_col)

    out = jnp.transpose(context.reshape(B, H, L_Q, D), (0, 2, 1, 3))
    if return_aux:
        return out, None, M, M_top
    return out, None


def prob_attention_ref(queries, keys, values, index_sample, *, factor=5, scale=None,
                       mask_flag=True, M_top=None):
    """Pure-JAX mirror of the torch forward (same sample indices).  Matmul inputs
    are cast to bf16 with f32 accumulation to mirror the kernel's MXU numerics."""
    B, L_Q, H, D = queries.shape
    _, L_K, _, _ = keys.shape
    f32 = jnp.float32
    bf16 = jnp.bfloat16
    Q = jnp.transpose(queries, (0, 2, 1, 3)).astype(f32)
    K = jnp.transpose(keys, (0, 2, 1, 3)).astype(f32)
    V = jnp.transpose(values, (0, 2, 1, 3)).astype(f32)
    Qb, Kb, Vb = Q.astype(bf16), K.astype(bf16), V.astype(bf16)
    u = min(factor * int(np.ceil(np.log(L_Q))), L_Q)

    K_sample = Kb[:, :, index_sample, :]                              # (B,H,L_Q,S,D)
    Q_K_sample = jnp.einsum('bhqe,bhqse->bhqs', Qb, K_sample,
                            preferred_element_type=f32)
    M = Q_K_sample.max(-1) - Q_K_sample.sum(-1) / L_K
    if M_top is None:
        _, M_top = jax.lax.top_k(M, u)
    Q_reduce = jnp.take_along_axis(Qb, M_top[..., None], axis=2)      # (B,H,u,D)
    scores = jnp.einsum('bhue,bhke->bhuk', Q_reduce, Kb,
                        preferred_element_type=f32)
    scale_val = scale if scale is not None else 1.0 / math.sqrt(D)
    scores = scores * scale_val
    if mask_flag:
        context = jnp.cumsum(V, axis=2)
        mask = jnp.arange(L_K)[None, None, None, :] > M_top[..., None]
        scores = jnp.where(mask, -jnp.inf, scores)
    else:
        context = jnp.broadcast_to(V.mean(axis=2, keepdims=True), (B, H, L_Q, D))
    attn = jax.nn.softmax(scores, axis=-1)
    out = jnp.einsum('bhuk,bhkd->bhud', attn.astype(bf16), Vb,
                     preferred_element_type=f32)
    bidx = jnp.arange(B)[:, None, None]
    hidx = jnp.arange(H)[None, :, None]
    context = context.at[bidx, hidx, M_top].set(out)
    return jnp.transpose(context, (0, 2, 1, 3)), None, M


if __name__ == "__main__":
    root = jax.random.PRNGKey(0)
    kq, kk, kv, ks = jax.random.split(root, 4)
    B, L, H, D = 2, 24, 2, 32                 # queries/keys/values: (B, L, H, D)
    queries = jax.random.normal(kq, (B, L, H, D), jnp.float32)
    keys_in = jax.random.normal(kk, (B, L, H, D), jnp.float32)
    values = jax.random.normal(kv, (B, L, H, D), jnp.float32)

    factor = 5
    U_part = min(factor * int(np.ceil(np.log(L))), L)
    index_sample = jax.random.randint(ks, (L, U_part), 0, L, jnp.int32)

    out, attn, M_kernel, M_top = prob_attention(
        queries, keys_in, values, None, factor=factor,
        index_sample=index_sample, return_aux=True)
    out = jax.block_until_ready(out)
    assert out.shape == (B, L, H, D)
    assert attn is None

    # Reference: check the sparsity metric M from kernel 1, then the attention
    # output of kernel 2 using the same top-u selection.
    ref, _, M_ref = prob_attention_ref(queries, keys_in, values, index_sample,
                                       factor=factor, M_top=M_top)
    ref = jax.block_until_ready(ref)

    if not np.allclose(np.asarray(M_kernel), np.asarray(M_ref), rtol=5e-3, atol=5e-3):
        raise AssertionError("Pallas sparsity metric M does not match JAX reference")
    if not np.allclose(np.asarray(out), np.asarray(ref), rtol=2e-2, atol=2e-2):
        raise AssertionError("Pallas ProbAttention does not match JAX reference")

    print("KERNEL_OK")
</pallas_src>

<mosaic_0001>
module attributes {stable_mosaic.version = 11 : i64} {
  func.func @_sample_score_kernel(%arg0: i32, %arg1: i32, %arg2: memref<24x24xi8, #tpu.memory_space<vmem>>, %arg3: memref<1x24x32xbf16, #tpu.memory_space<vmem>>, %arg4: memref<1x24x32xbf16, #tpu.memory_space<vmem>>, %arg5: memref<1x1x24xf32, #tpu.memory_space<vmem>>, %arg6: memref<1x24xf32, #tpu.memory_space<vmem>>, %arg7: memref<1x24xf32, #tpu.memory_space<vmem>>) attributes {dimension_semantics = [#tpu.dimension_semantics<parallel>, #tpu.dimension_semantics<arbitrary>], iteration_bounds = array<i64: 4, 1>, scalar_prefetch = 0 : i64, scratch_operands = 2 : i64, tpu.core_type = #tpu.core_type<tc>, window_params = [{transform_indices = @transform_0, window_bounds = array<i64: 24, 24>}, {transform_indices = @transform_1, window_bounds = array<i64: 1, 24, 32>}, {transform_indices = @transform_2, window_bounds = array<i64: 1, 24, 32>}, {transform_indices = @transform_3, window_bounds = array<i64: 1, 1, 24>}]} {
    %c0_i32 = arith.constant 0 : i32
    %0 = arith.cmpi eq, %arg1, %c0_i32 : i32
    %1 = arith.extui %0 : i1 to i32
    %c0_i32_0 = arith.constant 0 : i32
    %2 = arith.cmpi ne, %1, %c0_i32_0 : i32
    scf.if %2 {
      %cst_22 = arith.constant 0xFF800000 : f32
      %28 = vector.broadcast %cst_22 : f32 to vector<1x24xf32>
      %c0_23 = arith.constant 0 : index
      %c0_24 = arith.constant 0 : index
      %29 = vector.load %arg6[%c0_23, %c0_24] : memref<1x24xf32, #tpu.memory_space<vmem>>, vector<1x24xf32>
      tpu.vector_store %arg6[%c0_23, %c0_24], %28 {strides = array<i32>} : memref<1x24xf32, #tpu.memory_space<vmem>>, vector<1x24xf32>,
      %cst_25 = arith.constant 0.000000e+00 : f32
      %30 = vector.broadcast %cst_25 : f32 to vector<1x24xf32>
      %c0_26 = arith.constant 0 : index
      %c0_27 = arith.constant 0 : index
      %31 = vector.load %arg7[%c0_26, %c0_27] : memref<1x24xf32, #tpu.memory_space<vmem>>, vector<1x24xf32>
      tpu.vector_store %arg7[%c0_26, %c0_27], %30 {strides = array<i32>} : memref<1x24xf32, #tpu.memory_space<vmem>>, vector<1x24xf32>,
    } else {
    }
    %c0 = arith.constant 0 : index
    %c0_1 = arith.constant 0 : index
    %3 = vector.load %arg2[%c0, %c0_1] : memref<24x24xi8, #tpu.memory_space<vmem>>, vector<24x24xi8>
    %4 = arith.sitofp %3 : vector<24x24xi8> to vector<24x24xf32>
    %c0_2 = arith.constant 0 : index
    %c0_3 = arith.constant 0 : index
    %c0_4 = arith.constant 0 : index
    %5 = vector.load %arg4[%c0_2, %c0_3, %c0_4] : memref<1x24x32xbf16, #tpu.memory_space<vmem>>, vector<1x24x32xbf16>
    %6 = vector.shape_cast %5 : vector<1x24x32xbf16> to vector<24x32xbf16>
    %c0_5 = arith.constant 0 : index
    %c0_6 = arith.constant 0 : index
    %c0_7 = arith.constant 0 : index
    %7 = vector.load %arg3[%c0_5, %c0_6, %c0_7] : memref<1x24x32xbf16, #tpu.memory_space<vmem>>, vector<1x24x32xbf16>
    %8 = vector.shape_cast %7 : vector<1x24x32xbf16> to vector<24x32xbf16>
    %cst = arith.constant dense<0.000000e+00> : vector<24x24xf32>
    %9 = tpu.matmul %6, %8, %cst {dimension_numbers = #tpu.dot_dimension_numbers<[1], [1], [0], [0], [0, 0, 1, 0], [], []>} : vector<24x32xbf16>, vector<24x32xbf16>, vector<24x24xf32> -> vector<24x24xf32>
    %c0_8 = arith.constant 0 : index
    %c0_9 = arith.constant 0 : index
    %10 = vector.load %arg7[%c0_8, %c0_9] : memref<1x24xf32, #tpu.memory_space<vmem>>, vector<1x24xf32>
    %11 = arith.mulf %4, %9 : vector<24x24xf32>
    %cst_10 = arith.constant dense<0.000000e+00> : vector<24xf32>
    %12 = vector.multi_reduction <add>, %11, %cst_10 [0] : vector<24x24xf32> to vector<24xf32>
    %13 = vector.shape_cast %12 : vector<24xf32> to vector<1x24xf32>
    %14 = arith.addf %10, %13 : vector<1x24xf32>
    %c0_11 = arith.constant 0 : index
    %c0_12 = arith.constant 0 : index
    %15 = vector.load %arg7[%c0_11, %c0_12] : memref<1x24xf32, #tpu.memory_space<vmem>>, vector<1x24xf32>
    tpu.vector_store %arg7[%c0_11, %c0_12], %14 {strides = array<i32>} : memref<1x24xf32, #tpu.memory_space<vmem>>, vector<1x24xf32>,
    %cst_13 = arith.constant 0.000000e+00 : f32
    %16 = vector.broadcast %cst_13 : f32 to vector<24x24xf32>
    %17 = arith.cmpf ogt, %4, %16 : vector<24x24xf32>
    %cst_14 = arith.constant 0xFF800000 : f32
    %18 = vector.broadcast %cst_14 : f32 to vector<24x24xf32>
    %19 = arith.select %17, %9, %18 : vector<24x24xi1>, vector<24x24xf32>
    %cst_15 = arith.constant dense<0xFF800000> : vector<24xf32>
    %20 = vector.multi_reduction <maximumf>, %19, %cst_15 [0] : vector<24x24xf32> to vector<24xf32>
    %21 = vector.shape_cast %20 : vector<24xf32> to vector<1x24xf32>
    %c0_16 = arith.constant 0 : index
    %c0_17 = arith.constant 0 : index
    %22 = vector.load %arg6[%c0_16, %c0_17] : memref<1x24xf32, #tpu.memory_space<vmem>>, vector<1x24xf32>
    %23 = arith.maximumf %22, %21 : vector<1x24xf32>
    %c0_18 = arith.constant 0 : index
    %c0_19 = arith.constant 0 : index
    %24 = vector.load %arg6[%c0_18, %c0_19] : memref<1x24xf32, #tpu.memory_space<vmem>>, vector<1x24xf32>
    tpu.vector_store %arg6[%c0_18, %c0_19], %23 {strides = array<i32>} : memref<1x24xf32, #tpu.memory_space<vmem>>, vector<1x24xf32>,
    %c0_i32_20 = arith.constant 0 : i32
    %25 = arith.cmpi eq, %arg1, %c0_i32_20 : i32
    %26 = arith.extui %25 : i1 to i32
    %c0_i32_21 = arith.constant 0 : i32
    %27 = arith.cmpi ne, %26, %c0_i32_21 : i32
    scf.if %27 {
      %c0_22 = arith.constant 0 : index
      %c0_23 = arith.constant 0 : index
      %28 = vector.load %arg6[%c0_22, %c0_23] : memref<1x24xf32, #tpu.memory_space<vmem>>, vector<1x24xf32>
      %c0_24 = arith.constant 0 : index
      %c0_25 = arith.constant 0 : index
      %29 = vector.load %arg7[%c0_24, %c0_25] : memref<1x24xf32, #tpu.memory_space<vmem>>, vector<1x24xf32>
      %cst_26 = arith.constant 0.0416666679 : f32
      %30 = vector.broadcast %cst_26 : f32 to vector<1x24xf32>
      %31 = arith.mulf %29, %30 : vector<1x24xf32>
      %32 = arith.subf %28, %31 : vector<1x24xf32>
      %c0_27 = arith.constant 0 : index
      %c0_28 = arith.constant 0 : index
      %c0_29 = arith.constant 0 : index
      %33 = vector.load %arg5[%c0_27, %c0_28, %c0_29] : memref<1x1x24xf32, #tpu.memory_space<vmem>>, vector<1x1x24xf32>
      %34 = vector.shape_cast %33 : vector<1x1x24xf32> to vector<1x24xf32>
      %35 = vector.shape_cast %32 : vector<1x24xf32> to vector<1x1x24xf32>
      tpu.vector_store %arg5[%c0_27, %c0_28, %c0_29], %35 {strides = array<i32>} : memref<1x1x24xf32, #tpu.memory_space<vmem>>, vector<1x1x24xf32>,
    } else {
    }
    return
  }
  func.func @transform_0(%arg0: i32, %arg1: i32) -> (i32, i32) {
    %c0_i32 = arith.constant 0 : i32
    %c0_i32_0 = arith.constant 0 : i32
    return %arg1, %c0_i32 : i32, i32
  }
  func.func @transform_1(%arg0: i32, %arg1: i32) -> (i32, i32, i32) {
    %c0_i32 = arith.constant 0 : i32
    %c0_i32_0 = arith.constant 0 : i32
    %c0_i32_1 = arith.constant 0 : i32
    return %arg0, %c0_i32, %c0_i32_0 : i32, i32, i32
  }
  func.func @transform_2(%arg0: i32, %arg1: i32) -> (i32, i32, i32) {
    %c0_i32 = arith.constant 0 : i32
    %c0_i32_0 = arith.constant 0 : i32
    return %arg0, %arg1, %c0_i32 : i32, i32, i32
  }
  func.func @transform_3(%arg0: i32, %arg1: i32) -> (i32, i32, i32) {
    %c0_i32 = arith.constant 0 : i32
    %c0_i32_0 = arith.constant 0 : i32
    %c0_i32_1 = arith.constant 0 : i32
    return %arg0, %c0_i32, %c0_i32_0 : i32, i32, i32
  }
}

</mosaic_0001>

<bundles_post_ra>
// kernel: tpu_custom_call.1
= control target key start
LH: loop header
LB: loop body
LE: loop exit
PB: predicated region body
PF: predicated region fallthrough
CT: control target
= control target key end

     0   :  { %s1146_s0 = inlined_call_operand.hbm [shape: s8[24,24], index: 0, kind: input, shape index: {}]   ;;  %s1147_s1 = inlined_call_operand.hbm [shape: bf16[4,24,32], index: 1, kind: input, shape index: {}]   ;;  %s1148_s2 = inlined_call_operand.hbm [shape: bf16[4,24,32], index: 2, kind: input, shape index: {}]   ;;  %s1149_s3 = inlined_call_operand.hbm [shape: f32[4,1,24], index: 3, kind: output, shape index: {}]  }
   0x1   :  { %1160 = sst [smem:[#allocation15_spill]] %s1147_s1 }
   0x2   :  { %8 = vsyncpa [#allocation5], 0 }
   0x3   :  { %9 = vsyncpa [#allocation8], 0 }
   0x4   :  { %11 = vsyncpa [#allocation8 + $0x1], 0 }
   0x5   :  { %12 = vsyncpa [#allocation6], 0 }
   0x6   :  { %14 = vsyncpa [#allocation6 + $0x1], 0  ;;  %s872_s12 = smov 0   ;;  %s874_s13 = smov 0  }
   0x7   :  { %s876_s14 = smov 0   ;;  %s878_s15 = smov 0  }
   0x8   :  { %s880_s16 = smov 0   ;;  %s882_s17 = smov 0  }
   0x9 LB: > { %s32_s18 = sadd.s32 1, %s836_s16  ;;  %s65_s19 = sadd.s32 1, %s828_s14  ;;  %s840_s17 = sphi %s882_s17, %s20_s17   ;;  %s836_s16 = sphi %s880_s16, %s1185_s16   ;;  %s832_s15 = sphi %s878_s15, %s1184_s15   ;;  %s828_s14 = sphi %s876_s14, %s1183_s14   ;;  %s824_s13 = sphi %s874_s13, %s1182_s13   ;;  %s820_s12 = sphi %s872_s12, %s1181_s12  }
   0xa   : > { %p34_p0 = scmp.ge.s32.totalorder %s32_s18, 4  ;;  %p72_p1 = scmp.ne.s32.totalorder %s828_s14, %s824_s13 }
   0xb   : > { %p73_p2 = scmp.eq.s32.totalorder %s840_s17, 0  ;;  %p604_p4 = scmp.lt.s32.totalorder %s840_s17, 4 }
   0xc   : > { %s1187_s18 = smov (%p34_p0, %s32_s18), 0  ;;  %s172_s21 = sand.u32 1, %s840_s17  }
   0xd   : > { %1161 = sst [smem:[#allocation14_spill]] %s1187_s18  ;;  %p74_p3 = por %p73_p2, %p72_p1 }
   0xe   : > { %s62_s20 = ssub.s32 %s836_s16, %s1187_s18  ;;  %s174_s22 = sand.u32 1, %s828_s14  }
   0xf   : > { %p63_p5 = scmp.eq.s32.totalorder %s62_s20, 0  ;;  %s574_s23 = smul.u32 192, %s836_s16 }
  0x10   : > { %s921_s25 = smul.u32 12, %s174_s22  ;;  %s1162_s1 = sld [smem:[#allocation15_spill]] }
  0x11   : > { %s919_s24 = scalar_select %p63_p5, %s828_s14, %s65_s19  }
  0x12   : > { %p930_p6 = pnand %p604_p4, %p74_p3  ;;  %s176_s30 = scalar_lea.vmem [#allocation7], %s921_s25 }
  0x13   : > { %s183_s4 = sshll.u32 %s176_s30, 4  ;;  %s937_s5 = scalar_lea.sflag [#allocation8], %s172_s21  ;;  %s935_s4 = int_to_ptr.vmem [resolvable:$true] %s183_s4 }
  0x14   : > { %s1163_s29 = scalar_select %p930_p6, 1, 0 }
  0x15   : > { %p1154_p8 = pneg %p930_p6 }
  0x16   : > { %s928_s28 = scalar_lea.hbm %s1162_s1, %s574_s23  ;;  %s671_s9 = scalar_lea.hbm %s1162_s1, 768 }
  0x17   : > { %s666_s6 = scalar_lea.hbm %s928_s28, 192  ;;  %p672_p11 = scmp.lt.u32.totalorder %s928_s28, %s1162_s1 }
  0x18   : > { %p667_p7 = scmp.ne.s32.totalorder %s928_s28, %s666_s6  ;;  %p673_p12 = scmp.lt.u32.totalorder %s671_s9, %s666_s6 }
  0x19   : > { %p675_p0 = scmp.lt.u32.totalorder %s666_s6, %s928_s28 }
  0x1a   : > { %p669_p9 = pnand %p1154_p8, %p667_p7  ;;  %p674_p13 = por %p673_p12, %p672_p11 }
  0x1c   : > { %p670_p10 = pneg %p669_p9  ;;  %p676_p2 = por %p675_p0, %p674_p13 }
  0x1e   : > { %p677_p3 = pnand %p676_p2, %p670_p10 }
  0x20   : > { %680 = shalt.err (!%p677_p3)
}
  0x21   : > { %s681_s19 = scalar_lea.vmem %s935_s4, 192  ;;  %s842_s20 = smov [#allocation7]  }
  0x22   : > { %p682_p4 = scmp.ne.s32.totalorder %s935_s4, %s681_s19  ;;  %s686_s21 = sshll.u32 %s842_s20, 4  ;;  %s687_s21 = int_to_ptr.vmem [resolvable:$false] %s686_s21 }
  0x23   : > { %s688_s22 = scalar_lea.vmem %s687_s21, 384  ;;  %p689_p9 = scmp.lt.s32.totalorder %s935_s4, %s687_s21 }
  0x24   : > { %p684_p5 = pnand %p682_p4, %p1154_p8  ;;  %p690_p11 = scmp.lt.s32.totalorder %s688_s22, %s681_s19 }
  0x26   : > { %p685_p7 = pneg %p684_p5  ;;  %p691_p12 = por %p690_p11, %p689_p9 }
  0x28   : > { %p692_p13 = pnand %p691_p12, %p685_p7 }
  0x2a   : > { %695 = shalt.err (!%p692_p13)
}
  0x2b   : > { %s1150_s26 = smov 64   ;;  %s1151_s27 = smov 4  }
  0x2c   : > { %595 = dma.hbm_to_vmem [thread:$0]  (!%p930_p6), %s928_s28, 192, %s935_s4, %s937_s5, %s1150_s26, %s1150_s26, %s1151_s27  }
  0x2d   : > { %s969_s30 = sadd.s32 4294967295, %s840_s17   ;;  %s538_s6 = sadd.s32 4294967294, %s840_s17  }
  0x2e   : > { %p78_p10 = scmp.ne.s32.totalorder %s824_s13, %s820_s12  ;;  %p1153_p0 = scmp.eq.s32.totalorder %s969_s30, 0 }
  0x2f   : > { %p130_p2 = scmp.eq.s32.totalorder %s969_s30, 3  ;;  %p136_p3 = scmp.eq.s32.totalorder %s538_s6, 3 }
  0x30   : > { %p539_p4 = scmp.ge.s32.totalorder %s840_s17, 1  ;;  %p979_p5 = por %p1153_p0, %p78_p10 }
  0x31   : > { %p986_p7 = por %p130_p2, %p72_p1  ;;  %p990_p9 = por %p136_p3, %p78_p10 }
  0x32   : > { %s1164_s7 = scalar_select %p979_p5, 1, 0 }
  0x33   : > { %s1165_s28 = scalar_select %p986_p7, 1, 0 }
  0x34   : > { %s1166_s4 = scalar_select %p990_p9, 1, 0 }
  0x35   : > { %p143_p11 = scmp.lt.s32.totalorder %s840_s17, 5  ;;  %s845_s9 = smov [#allocation4]  }
  0x36   : > { %s158_s10 = sshll.u32 %s845_s9, 4  ;;  %s197_s19 = scalar_lea.vmem [#allocation9], %s921_s25  ;;  %s999_s10 = int_to_ptr.vmem [resolvable:$true] %s158_s10 }
  0x37   : > { %p995_p12 = pnand %p539_p4, %p143_p11  ;;  %s206_s20 = sshll.u32 %s197_s19, 4  ;;  %s1017_s20 = int_to_ptr.vmem [resolvable:$true] %s206_s20 }
  0x38   : > { %s1015_s6 = scalar_lea.hbm %s1148_s2, %s574_s23  ;;  %s696_s27 = scalar_lea.hbm %s1146_s0, 96 }
  0x39   : > { %s1167_s8 = scalar_select %p995_p12, 1, 0 }
  0x3a   : > { %p588_p13 = pneg %p995_p12  ;;  %p697_p10 = scmp.ne.s32.totalorder %s1146_s0, %s696_s27 }
  0x3b   : > { %p703_p11 = scmp.lt.u32.totalorder %s696_s27, %s1146_s0 }
  0x3c   : > { %p1005_p1 = pnand %p588_p13, %p1153_p0 }
  0x3e   : > { %p698_p2 = pneg %p1005_p1 }
  0x40   : > { %p699_p3 = pnand %p698_p2, %p697_p10 }
  0x42   : > { %p700_p4 = pneg %p699_p3 }
  0x44   : > { %p705_p13 = pnand %p703_p11, %p700_p4 }
  0x46   : > { %708 = shalt.err (!%p705_p13)
}
  0x47   : > { %s709_s23 = scalar_lea.vmem %s999_s10, 96  ;;  %p717_p7 = scmp.lt.s32.totalorder %s999_s10, %s999_s10 }
  0x48   : > { %p710_p0 = scmp.ne.s32.totalorder %s999_s10, %s709_s23  ;;  %p718_p5 = scmp.lt.s32.totalorder %s709_s23, %s709_s23 }
  0x4a   : > { %p712_p8 = pnand %p710_p0, %p698_p2  ;;  %p719_p12 = por %p718_p5, %p717_p7 }
  0x4c   : > { %p713_p9 = pneg %p712_p8 }
  0x4e   : > { %p720_p6 = pnand %p719_p12, %p713_p9 }
  0x50   : > { %723 = shalt.err (!%p720_p6)
}
  0x51   : > { %s846_s1 = smov 32   ;;  %s847_s18 = smov 2  }
  0x52   : > { %591 = dma.hbm_to_vmem [thread:$0]  (!%p1005_p1), %s1146_s0, 96, %s999_s10, [#allocation5], %s846_s1, %s846_s1, %s847_s18  }
  0x53   : > { %s724_s21 = scalar_lea.hbm %s1015_s6, 192  ;;  %p1169_p0 = scmp.ne.s32.totalorder %s1163_s29, 0 }
  0x54   : > { %p725_p8 = scmp.ne.s32.totalorder %s1015_s6, %s724_s21  ;;  %s729_s25 = scalar_lea.hbm %s1148_s2, 768 }
  0x55   : > { %p1170_p5 = pneg %p1169_p0  ;;  %p730_p9 = scmp.lt.u32.totalorder %s1015_s6, %s1148_s2 }
  0x56   : > { %p731_p12 = scmp.lt.u32.totalorder %s729_s25, %s724_s21  ;;  %p733_p2 = scmp.lt.u32.totalorder %s724_s21, %s1015_s6 }
  0x57   : > { %p727_p7 = pnand %p725_p8, %p1170_p5 }
  0x58   : > { %p732_p10 = por %p731_p12, %p730_p9 }
  0x59   : > { %p728_p6 = pneg %p727_p7 }
  0x5a   : > { %p734_p3 = por %p733_p2, %p732_p10 }
  0x5c   : > { %p735_p4 = pnand %p734_p3, %p728_p6 }
  0x5e   : > { %738 = shalt.err (!%p735_p4)
}
  0x5f   : > { %s739_s10 = scalar_lea.vmem %s1017_s20, 192  ;;  %p1171_p11 = pmov %p1170_p5 }
  0x60   : > { %p740_p1 = scmp.ne.s32.totalorder %s1017_s20, %s739_s10  ;;  %s848_s11 = smov [#allocation9]  }
  0x61   : > { %s744_s1 = sshll.u32 %s848_s11, 4  ;;  %s745_s1 = int_to_ptr.vmem [resolvable:$false] %s744_s1 }
  0x62   : > { %p742_p13 = pnand %p740_p1, %p1171_p11  ;;  %s746_s18 = scalar_lea.vmem %s745_s1, 384 }
  0x63   : > { %p747_p5 = scmp.lt.s32.totalorder %s1017_s20, %s745_s1  ;;  %p748_p7 = scmp.lt.s32.totalorder %s746_s18, %s739_s10 }
  0x64   : > { %p743_p8 = pneg %p742_p13 }
  0x65   : > { %p749_p9 = por %p748_p7, %p747_p5 }
  0x67   : > { %p750_p12 = pnand %p749_p9, %p743_p8 }
  0x69   : > { %753 = shalt.err (!%p750_p12)
}
  0x6a   : > { %s1172_s26 = smov 4   ;;  %s1173_s27 = smov 64  }
  0x6b   : > { %598 = dma.hbm_to_vmem [thread:$0]  (!%p1169_p0), %s1015_s6, 192, %s1017_s20, %s937_s5, %s1173_s27, %s1173_s27, %s1172_s26  }
  0x6c   : > { %p1174_p6 = scmp.ne.s32.totalorder %s1167_s8, 0 }
  0x6d   : > { %p1175_p10 = scmp.eq.s32.totalorder (!%p1174_p6), %s969_s30, 0 }
  0x6e   : > { %218 = sbr.rel (%p1174_p6) target bundleno = 402 (0x192), region = 32 }
  0x75   : > { %807 = dma.done.wait (%p1175_p10), [#allocation5], 96   ;;  %p1176_p2 = pmov %p1175_p10 }
  0x76   : > { %s224_s29 = sand.u32 1, %s969_s30   ;;  %s1075_s21 = sand.u32 1, %s824_s13  }
  0x77   : > { %809 = vsyncadd (%p1176_p2), [#allocation5], 4294967200  ;;  %s577_s22 = smul.u32 12, %s1075_s21  ;;  %s225_s9 = scalar_lea.sflag [#allocation8], %s224_s29 }
  0x78   : > { %p1177_p0 = scmp.ne.s32.totalorder %s1164_s7, 0 }
  0x79   : > { %s228_s25 = scalar_lea.vmem [#allocation7], %s577_s22 }
  0x7a   : > { %811 = dma.done.wait (%p1177_p0), %s225_s9, 384  }
  0x7b   : > { %813 = vsyncadd (%p1177_p0), %s225_s9, 4294966912  ;;  %vm305_vm0 = vcmask 261120   ;;  %v662_v0 = vld [vmem:[%s228_s25] sm:$0xff]   ;;  %v663_v1 = vld [vmem:[%s228_s25 + $0x8] ss:$0 sps:$4 sm:$0xff]   ;;  %s237_s5 = scalar_lea.vmem [#allocation9], %s577_s22 }
  0x7c   : > { %571 = vmatprep.subr.msk.bf16.mxu0 %vm305_vm0, %v662_v0  ;;  %v313_v2 = vsel %vm305_vm0, %v662_v0, 0  ;;  %v664_v3 = vld [vmem:[%s237_s5] sm:$0xff]   ;;  %v316_v4 = vsel %vm305_vm0, %v663_v1, 0  ;;  %v665_v5 = vld [vmem:[%s237_s5 + $0x8] ss:$0 sps:$4 sm:$0xff]   ;;  %vm271_vm1 = vcmask 188416  }
  0x7d   : > { %564 = vmatpush3.bf16.xpose.msra.mxu0 %v313_v2  ;;  %567 = vmatprep.mubr.msk.bf16.mxu0 %vm305_vm0, %v664_v3  ;;  %v849_v6 = vmov -inf   ;;  %v850_v7 = vmov 0.0   ;;  %v556_v8 = vld [vmem:[#allocation4] sm:$0xf]   ;;  %v276_v9 = vld [vmem:[#allocation4 + $0x4] sm:$0x3] }
  0x7e   : > { %572 = vmatprep.subr.msk.bf16.mxu0 %vm305_vm0, %v663_v1  ;;  %272 = vst.msk [vmem:[#allocation2] sm:$0x1] %vm271_vm1, %v849_v6  ;;  %273 = vst.msk [vmem:[#allocation3] sm:$0x1] %vm271_vm1, %v850_v7  ;;  %v557_v10 = vunpack.c.0.s8 %v556_v8  ;;  %v279_v11 = vunpack.c.0.s8 %v276_v9  ;;  %v558_v12 = vunpack.c.1.s8 %v556_v8  ;;  %vm370_vm5 = vcmask 195584   ;;  %s552_s30 = sshll.u32 %s832_s15, 4 }
  0x7f   : > { %s263_s7 = scalar_lea.vmem [#allocation10], %s1075_s21  ;;  %s1097_s19 = scalar_lea.hbm %s1149_s3, %s552_s30 }
  0x80   : > { %v280_v13 = vcvt.s32.f32 %v557_v10  ;;  %v282_v14 = vcvt.s32.f32 %v279_v11  ;;  %v281_v15 = vcvt.s32.f32 %v558_v12  ;;  %s426_s8 = sshll.u32 %s263_s7, 4  ;;  %s414_s23 = scalar_lea.sflag [#allocation6], %s1075_s21  ;;  %s1099_s8 = int_to_ptr.vmem [resolvable:$true] %s426_s8 }
  0x81   : > { %s754_s10 = scalar_lea.vmem %s1099_s8, 16  ;;  %p1178_p4 = scmp.ne.s32.totalorder %s1165_s28, 0 }
  0x82   : > { %vm385_vm2 = vcmp.gt.f32.partialorder %v280_v13, 0.0  ;;  %vm387_vm3 = vcmp.gt.f32.partialorder %v282_v14, 0.0  ;;  %vm386_vm4 = vcmp.gt.f32.partialorder %v281_v15, 0.0  ;;  %p755_p3 = scmp.ne.s32.totalorder %s1099_s8, %s754_s10  ;;  %s851_s15 = smov [#allocation10]  }
  0x83   : > { %s758_s11 = sshll.u32 %s851_s15, 4  ;;  %s759_s11 = int_to_ptr.vmem [resolvable:$false] %s758_s11 }
  0x84   : > { %p756_p1 = pnand %p755_p3, %p1178_p4  ;;  %s760_s1 = scalar_lea.vmem %s759_s11, 32 }
  0x85   : > { %566 = vmatpush3.bf16.xpose.msra.mxu0 %v316_v4  ;;  %v402_v46 = vld [vmem:[#allocation2] sm:$0x1]  ;;  %v366_v48 = vld [vmem:[#allocation3] sm:$0x1]  ;;  %p761_p13 = scmp.lt.s32.totalorder %s1099_s8, %s759_s11  ;;  %p762_p8 = scmp.lt.s32.totalorder %s760_s1, %s754_s10 }
  0x86   : > { %p757_p11 = pneg %p756_p1 }
  0x87   : > { %p763_p5 = por %p762_p8, %p761_p13 }
  0x89   : > { %p764_p7 = pnand %p763_p5, %p757_p11 }
  0x8c   : > { %568 = vmatmul.mubr.msk.bf16.vlgmr.msra.gmra.mrb[0].mxu0 %vm305_vm0, %v665_v5 }
 0x15f   : > { %v569_v16 = vpop.f32.mrb[0].mxu0 }
 0x160   : > { %v352_v17 = vpop.f32.mrb[1].mxu0  ;;  %v369_v22 = vmul.f32 %v569_v16, %v282_v14  ;;  %v390_v23 = vsel %vm387_vm3, %v569_v16, -inf }
 0x161   : > { %v367_v18 = vmul.f32 %v352_v17, %v280_v13  ;;  %v388_v19 = vsel %vm385_vm2, %v352_v17, -inf  ;;  %v570_v20 = vpop.f32.mrb[2].mxu0  ;;  %v393_v31 = vsel %vm370_vm5, %v390_v23, -inf }
 0x162   : > { %v355_v21 = vpop.f32.mrb[3].mxu0  ;;  %v391_v26 = vsel %vm370_vm5, %v388_v19, -inf  ;;  %v374_v33 = vsel %vm370_vm5, %v369_v22, 0.0 }
 0x163   : > { %v368_v24 = vmul.f32 %v355_v21, %v281_v15  ;;  %v389_v25 = vsel %vm386_vm4, %v355_v21, -inf  ;;  %v371_v28 = vsel %vm370_vm5, %v367_v18, 0.0 }
 0x164   : > { %v392_v27 = vsel %vm370_vm5, %v389_v25, -inf }
 0x165   : > { %v372_v29 = vsel %vm370_vm5, %v368_v24, 0.0  ;;  %v394_v30 = vmax.f32 %v391_v26, %v392_v27 }
 0x166   : > { %v373_v32 = vadd.f32 %v372_v29, %v371_v28 }
 0x167   : > { %v395_v34 = vmax.f32 %v394_v30, %v393_v31 }
 0x168   : > { %v375_v35 = vadd.f32 %v374_v33, %v373_v32 }
 0x169   : > { %v396_v36 = vrot.slane %v395_v34, 4 }
 0x16a   : > { %v376_v37 = vrot.slane %v375_v35, 4 }
 0x16b   : > { %v397_v38 = vmax.f32 %v395_v34, %v396_v36 }
 0x16c   : > { %v377_v39 = vadd.f32 %v376_v37, %v375_v35 }
 0x16d   : > { %v398_v40 = vrot.slane %v397_v38, 2 }
 0x16e   : > { %v378_v41 = vrot.slane %v377_v39, 2 }
 0x16f   : > { %v399_v42 = vmax.f32 %v397_v38, %v398_v40 }
 0x170   : > { %v379_v43 = vadd.f32 %v378_v41, %v377_v39 }
 0x171   : > { %v400_v44 = vrot.slane %v399_v42, 1 }
 0x172   : > { %v380_v45 = vrot.slane %v379_v43, 1 }
 0x173   : > { %v401_v47 = vmax.f32 %v399_v42, %v400_v44 }
 0x174   : > { %v381_v49 = vadd.f32 %v380_v45, %v379_v43 }
 0x175   : > { %v403_v50 = vmax.f32 %v402_v46, %v401_v47 }
 0x176   : > { %v382_v51 = vadd.f32 %v381_v49, %v366_v48 }
 0x177   : > { %404 = vst.msk [vmem:[#allocation2] sm:$0x1] %vm271_vm1, %v403_v50 }
 0x178   : > { %384 = vst.msk [vmem:[#allocation3] sm:$0x1] %vm271_vm1, %v382_v51 }
 0x17e   : > { %v408_v54 = vld [vmem:[#allocation2] sm:$0x1] }
 0x17f   : > { %v409_v52 = vld [vmem:[#allocation3] sm:$0x1] }
 0x180   : > { %v410_v53 = vmul.f32 0.041666668, %v409_v52 }
 0x182   : > { %v411_v55 = vsub.f32 %v408_v54, %v410_v53 }
 0x184   : > { %412 = vst.msk [vmem:[%s263_s7] sm:$0x1] %vm271_vm1, %v411_v55 }
 0x185   : > { %767 = shalt.err (!%p764_p7)
}
 0x186   : > { %s768_s18 = scalar_lea.hbm %s1097_s19, 16  ;;  %s772_s29 = scalar_lea.hbm %s1149_s3, 64 }
 0x187   : > { %p769_p9 = scmp.ne.s32.totalorder %s1097_s19, %s768_s18  ;;  %p773_p10 = scmp.lt.u32.totalorder %s1097_s19, %s1149_s3 }
 0x188   : > { %p774_p2 = scmp.lt.u32.totalorder %s772_s29, %s768_s18  ;;  %p776_p3 = scmp.lt.u32.totalorder %s768_s18, %s1097_s19 }
 0x189   : > { %p770_p12 = pnand %p769_p9, %p1178_p4 }
 0x18a   : > { %p775_p0 = por %p774_p2, %p773_p10 }
 0x18b   : > { %p771_p6 = pneg %p770_p12 }
 0x18c   : > { %p777_p1 = por %p776_p3, %p775_p0 }
 0x18e   : > { %p778_p11 = pnand %p777_p1, %p771_p6 }
 0x190   : > { %781 = shalt.err (!%p778_p11)
}
 0x191   : > { %586 = dma.vmem_to_hbm [thread:$0]  (%p1178_p4), %s1099_s8, 16, %s1097_s19, %s414_s23  }
 0x192 PF: > { %p606_p13 = scmp.ge.s32.totalorder %s840_s17, 2  ;;  %s438_s9 = sand.u32 1, %s820_s12  }
 0x193   : > { %p1179_p8 = scmp.ne.s32.totalorder %s1166_s4, 0  ;;  %s439_s25 = scalar_lea.sflag [#allocation6], %s438_s9 }
 0x195   : > { %p600_p5 = pnand %p606_p13, %p1179_p8 }
 0x197   : > { %815 = dma.done.wait (!%p600_p5), %s439_s25, 16  }
 0x198   : > { %817 = vsyncadd (!%p600_p5), %s439_s25, 4294967280  ;;  %s20_s17 = sadd.s32 1, %s840_s17   ;;  %s1180_s28 = sld [smem:[#allocation14_spill]] }
 0x199   : > { %p17_p7 = scmp.ge.s32.totalorder %s20_s17, 6   ;;  %s1181_s12 = smov %s824_s13 }
 0x19a   : > { %s1182_s13 = smov %s828_s14  ;;  %s1183_s14 = smov %s919_s24 }
 0x19b   : > { %s1184_s15 = smov %s836_s16  ;;  %19 = sbr.rel (!%p17_p7) target bundleno = 9 (0x9), region = 102 }
 0x19e   : > { %s1185_s16 = smov %s1180_s28 }
 0x1a2   :  { %443 = vsyncpa [#allocation5], 1 }
 0x1a3   :  { %445 = vsyncpa [#allocation5 + $0x1], 1 }
 0x1a4   :  { %446 = vsyncpa [#allocation8], 1 }
 0x1a5   :  { %448 = vsyncpa [#allocation8 + $0x1], 1 }
 0x1a6   :  { %449 = vsyncpa [#allocation6], 1 }
 0x1a7   :  { %451 = vsyncpa [#allocation6 + $0x1], 1 }

</bundles_post_ra>
